<compile_context>
chip_gen: v6e
topology: v6e:2x2x1
jax: 0.10.0
libtpu: 0.0.40
codegen_flags: <defaults>
</compile_context>

<pallas_src>
import functools
import math

import jax
import jax.numpy as jnp
from jax.experimental import pallas as pl
from jax.experimental.pallas import tpu as pltpu


_LANE = 128      # lane width (last dim)
_SUBLANE = 8     # sublane width (second-to-last dim)


def _cdiv(a, b):
    return (a + b - 1) // b


def _round_up(n, m):
    return _cdiv(n, m) * m


def _pad2d(a, rows, cols):
    r, c = a.shape
    if r == rows and c == cols:
        return a
    return jnp.pad(a, ((0, rows - r), (0, cols - c)))


def _const_spec(shape):
    """BlockSpec for a grid-invariant (weight/bias) input.

    Single-buffered: the tile never changes across grid steps, so
    double-buffering would only double its VMEM footprint.
    """
    try:
        return pl.BlockSpec(shape, lambda i: (0, 0),
                            pipeline_mode=pl.Buffered(1))
    except (TypeError, AttributeError):
        return pl.BlockSpec(shape, lambda i: (0, 0))


# ---------------------------------------------------------------------------
# One-time parameter preparation (padding / casting is NOT on the hot path).
# ---------------------------------------------------------------------------
def prepare_encoder_params(block_params, compute_dtype=jnp.bfloat16):
    """Pads, casts and packs the Encoder weights once.

    block_params[i]: dict with w1 (din, dout), b1 (dout,), wt (tdim, dout),
    bt (dout,), w2 (dout, dout), b2 (dout,).
    """
    n_blocks = len(block_params)
    dims_in = [int(p["w1"].shape[0]) for p in block_params]
    dims_out = [int(p["w1"].shape[1]) for p in block_params]
    tdim = int(block_params[0]["wt"].shape[0])

    for i in range(n_blocks - 1):
        assert dims_in[i + 1] == dims_out[i], (
            f"block {i + 1} dim_in ({dims_in[i + 1]}) must equal block {i} "
            f"dim_out ({dims_out[i]}) for the fused chain")
    for p in block_params:
        assert int(p["wt"].shape[0]) == tdim, "all blocks must share tdim"

    d_in_pad = [_round_up(d, _LANE) for d in dims_in]
    d_out_pad = [_round_up(d, _LANE) for d in dims_out]
    t_pad = _round_up(tdim, _LANE)
    sum_do_pad = sum(d_out_pad)

    # Pack all temb-projection weights into ONE wide (t_pad, sum_do_pad)
    # matrix so the kernel does a single wide matmul per grid step.
    wt_cat = jnp.zeros((t_pad, sum_do_pad), jnp.float32)
    bt_cat = jnp.zeros((1, sum_do_pad), jnp.float32)
    off = 0
    blocks = []
    for blk, p in enumerate(block_params):
        di_p, do_p = d_in_pad[blk], d_out_pad[blk]
        wt_cat = wt_cat.at[:tdim, off:off + dims_out[blk]].set(
            p["wt"].astype(jnp.float32))
        bt_cat = bt_cat.at[0, off:off + dims_out[blk]].set(
            p["bt"].astype(jnp.float32))
        off += do_p
        blocks.append(dict(
            w1=_pad2d(p["w1"], di_p, do_p).astype(compute_dtype),
            b1=_pad2d(p["b1"].reshape(1, -1), 1, do_p).astype(jnp.float32),
            w2=_pad2d(p["w2"], do_p, do_p).astype(compute_dtype),
            b2=_pad2d(p["b2"].reshape(1, -1), 1, do_p).astype(jnp.float32),
        ))

    return dict(
        n_blocks=n_blocks, dims_in=dims_in, dims_out=dims_out, tdim=tdim,
        d_in_pad=d_in_pad, d_out_pad=d_out_pad, t_pad=t_pad,
        sum_do_pad=sum_do_pad, compute_dtype=compute_dtype,
        wt_cat=wt_cat.astype(compute_dtype), bt_cat=bt_cat, blocks=blocks)


# ---------------------------------------------------------------------------
# Kernel
# ---------------------------------------------------------------------------
def _fused_encoder_kernel(n_blocks, do_pads, compute_dtype,
                          x_ref, t_ref, wt_ref, bt_ref, *rest):
    """rest = 4*n_blocks weight/bias refs (w1,b1,w2,b2), then n_blocks outputs.

    Per block:  out = relu( (relu(x@W1+b1) + relu(t@Wt+bt)) @ W2 + b2 )
    The running activation stays in VMEM/vregs across all blocks.
    """
    w_refs = rest[: 4 * n_blocks]
    out_refs = rest[4 * n_blocks:]

    h_op = x_ref[...]          # already compute_dtype (cast in wrapper)
    t_op = t_ref[...]

    # All temb projections in ONE wide matmul (better MXU fill, one epilogue),
    # f32 accumulation + f32 ReLU.
    t_all = jnp.dot(t_op, wt_ref[...], preferred_element_type=jnp.float32)
    t_all = jnp.maximum(t_all + bt_ref[...], 0.0)

    off = 0
    for i in range(n_blocks):
        w1, b1, w2, b2 = w_refs[4 * i: 4 * i + 4]
        do_p = do_pads[i]

        # layer1: Linear + ReLU
        h1 = jnp.dot(h_op, w1[...], preferred_element_type=jnp.float32)
        h1 = jnp.maximum(h1 + b1[...], 0.0)

        # x += temb_proj(t)   (static, 128-aligned lane slice of t_all)
        g = (h1 + t_all[:, off:off + do_p]).astype(compute_dtype)
        off += do_p

        # layer2: Linear + ReLU
        h2 = jnp.dot(g, w2[...], preferred_element_type=jnp.float32)
        h2 = jnp.maximum(h2 + b2[...], 0.0)

        out_refs[i][...] = h2.astype(out_refs[i].dtype)
        h_op = h2.astype(compute_dtype)   # feeds the next block


# ---------------------------------------------------------------------------
# Wrapper
# ---------------------------------------------------------------------------
def _estimate_vmem_bytes(tb, prep, out_dtype, weight_bufs):
    """Rough VMEM footprint for a batch tile of tb rows."""
    cb = jnp.dtype(prep["compute_dtype"]).itemsize
    ob = jnp.dtype(out_dtype).itemsize
    d_in0 = prep["d_in_pad"][0]
    t_pad, sum_do = prep["t_pad"], prep["sum_do_pad"]
    do_pads = prep["d_out_pad"]

    weights = t_pad * sum_do * cb + sum_do * 4           # wt_cat + bt_cat
    d_prev = d_in0
    for do in do_pads:
        weights += (d_prev * do + do * do) * cb + 2 * do * 4
        d_prev = do
    weights *= weight_bufs                               # 1 if single-buffered

    acts_in = 2 * tb * (d_in0 + t_pad) * cb              # double-buffered inputs
    acts_out = 2 * tb * sum(do_pads) * ob                # double-buffered outputs
    inter = tb * sum_do * 4 + 4 * tb * max(do_pads) * 4  # t_all + block temps (f32)
    return weights + acts_in + acts_out + inter


def encoder_forward(x, t, prep, *, out_dtype=None, batch_tile=512,
                    vmem_budget_bytes=40 << 20):
    """Encoder forward: returns (skip_connections list, final x).

    x: (B, encoder_dim[0]), t: (B, tdim); prep = prepare_encoder_params(...).
    """
    compute_dtype = prep["compute_dtype"]
    if out_dtype is None:
        out_dtype = compute_dtype         # bf16 skips: halves HBM writeback
    n_blocks = prep["n_blocks"]
    B = x.shape[0]
    assert x.shape[1] == prep["dims_in"][0]
    assert t.shape == (B, prep["tdim"])

    weight_bufs = 1 if hasattr(pl, "Buffered") else 2

    # Batch tiling: >= 2 grid steps whenever possible (v7x: both TensorCores),
    # padding waste < one tile, tile shrunk while the VMEM estimate exceeds
    # the (v7x-safe) budget.
    b_min = _round_up(B, _SUBLANE)
    n_tiles = max(2 if b_min >= 2 * _SUBLANE else 1, _cdiv(b_min, batch_tile))
    tb = _round_up(_cdiv(b_min, n_tiles), _SUBLANE)
    while tb > _SUBLANE and _estimate_vmem_bytes(
            tb, prep, out_dtype, weight_bufs) > vmem_budget_bytes:
        tb = _round_up(_cdiv(tb, 2), _SUBLANE)
    n_tiles = _cdiv(b_min, tb)
    b_pad = n_tiles * tb

    est = _estimate_vmem_bytes(tb, prep, out_dtype, weight_bufs)
    vmem_limit = int(min(max(int(est * 1.5) + (4 << 20), 16 << 20), 64 << 20))

    # Cast inputs to the (narrow) compute dtype before padding: lane-dense
    # tiles and half the input DMA bytes vs f32.  Padded lanes stay zero
    # through every block (zero weight cols + zero bias + ReLU).
    x_p = _pad2d(x.astype(compute_dtype), b_pad, prep["d_in_pad"][0])
    t_p = _pad2d(t.astype(compute_dtype), b_pad, prep["t_pad"])

    in_specs = [
        pl.BlockSpec((tb, prep["d_in_pad"][0]), lambda i: (i, 0)),
        pl.BlockSpec((tb, prep["t_pad"]), lambda i: (i, 0)),
        _const_spec(prep["wt_cat"].shape),
        _const_spec(prep["bt_cat"].shape),
    ]
    flat_weights = [prep["wt_cat"], prep["bt_cat"]]
    for blk in prep["blocks"]:
        for name in ("w1", "b1", "w2", "b2"):
            arr = blk[name]
            flat_weights.append(arr)
            in_specs.append(_const_spec(arr.shape))

    out_shape = tuple(
        jax.ShapeDtypeStruct((b_pad, prep["d_out_pad"][bi]), out_dtype)
        for bi in range(n_blocks))
    out_specs = tuple(
        pl.BlockSpec((tb, prep["d_out_pad"][bi]), lambda i: (i, 0))
        for bi in range(n_blocks))

    kernel = functools.partial(_fused_encoder_kernel, n_blocks,
                               tuple(prep["d_out_pad"]), compute_dtype)

    outs = pl.pallas_call(
        kernel,
        grid=(n_tiles,),
        in_specs=in_specs,
        out_specs=out_specs,
        out_shape=out_shape,
        compiler_params=pltpu.CompilerParams(
            dimension_semantics=("parallel",),     # shard batch tiles over TCs
            vmem_limit_bytes=vmem_limit),
    )(x_p, t_p, *flat_weights)

    if not isinstance(outs, (tuple, list)):
        outs = (outs,)
    skips = [outs[bi][:B, :prep["dims_out"][bi]] for bi in range(n_blocks)]
    return skips, skips[-1]


# ---------------------------------------------------------------------------
# Parameter init (PyTorch nn.Linear default: U(-k, k), k = 1/sqrt(fan_in))
# ---------------------------------------------------------------------------
def init_linear_params(key, fan_in, fan_out, dtype=jnp.float32):
    kw, kb = jax.random.split(key)
    bound = 1.0 / math.sqrt(fan_in)
    w = jax.random.uniform(kw, (fan_in, fan_out), dtype, minval=-bound, maxval=bound)
    b = jax.random.uniform(kb, (fan_out,), dtype, minval=-bound, maxval=bound)
    return w, b


def init_encoder_params(key, encoder_dim, tdim, dtype=jnp.float32):
    blocks = []
    for i in range(len(encoder_dim) - 1):
        dim_in, dim_out = encoder_dim[i], encoder_dim[i + 1]
        key, k1, k2, k3 = jax.random.split(key, 4)
        w1, b1 = init_linear_params(k1, dim_in, dim_out, dtype)
        wt, bt = init_linear_params(k2, tdim, dim_out, dtype)
        w2, b2 = init_linear_params(k3, dim_out, dim_out, dtype)
        blocks.append(dict(w1=w1, b1=b1, wt=wt, bt=bt, w2=w2, b2=b2))
    return blocks


def _reference_forward(x, t, block_params):
    """Pure-JAX f32 reference (module semantics)."""
    skips = []
    for p in block_params:
        h = jnp.maximum(x @ p["w1"] + p["b1"], 0.0)
        h = h + jnp.maximum(t @ p["wt"] + p["bt"], 0.0)
        x = jnp.maximum(h @ p["w2"] + p["b2"], 0.0)
        skips.append(x)
    return skips, x


if __name__ == "__main__":
    key = jax.random.PRNGKey(0)
    kx, kt, kp = jax.random.split(key, 3)

    # small shapes consistent with the module; batch=16 -> 2 grid tiles.
    batch = 16
    encoder_dim = [16, 32, 64]   # -> two EncodingBlocks: 16->32, 32->64
    tdim = 32

    x = jax.random.normal(kx, (batch, encoder_dim[0]), jnp.float32)
    t = jax.random.normal(kt, (batch, tdim), jnp.float32)
    block_params = init_encoder_params(kp, encoder_dim, tdim)

    ref_skips, ref_out = _reference_forward(x, t, block_params)

    # --- main path: bf16 MXU operands + bf16 skip outputs, f32 accumulation ---
    prep_bf16 = prepare_encoder_params(block_params, compute_dtype=jnp.bfloat16)
    skips, out = encoder_forward(x, t, prep_bf16)
    out = jax.block_until_ready(out)
    skips = [jax.block_until_ready(s) for s in skips]

    assert out.shape == (batch, encoder_dim[-1])
    assert len(skips) == len(encoder_dim) - 1
    assert jnp.allclose(out.astype(jnp.float32), ref_out, atol=5e-2, rtol=5e-2)
    for s, rs in zip(skips, ref_skips):
        assert s.shape == rs.shape
        assert jnp.allclose(s.astype(jnp.float32), rs, atol=5e-2, rtol=5e-2)

    # --- f32 compute path: tight check of the fused-kernel structure ---
    prep_f32 = prepare_encoder_params(block_params, compute_dtype=jnp.float32)
    skips32, out32 = encoder_forward(x, t, prep_f32)
    out32 = jax.block_until_ready(out32)
    assert jnp.allclose(out32, ref_out, atol=1e-4, rtol=1e-4)
    for s, rs in zip(skips32, ref_skips):
        assert jnp.allclose(s, rs, atol=1e-4, rtol=1e-4)

    print("KERNEL_OK")
</pallas_src>

<mosaic_0001>
module attributes {stable_mosaic.version = 11 : i64} {
  func.func @_fused_encoder_kernel(%arg0: i32, %arg1: memref<8x128xbf16, #tpu.memory_space<vmem>>, %arg2: memref<8x128xbf16, #tpu.memory_space<vmem>>, %arg3: memref<128x256xbf16, #tpu.memory_space<vmem>>, %arg4: memref<1x256xf32, #tpu.memory_space<vmem>>, %arg5: memref<128x128xbf16, #tpu.memory_space<vmem>>, %arg6: memref<1x128xf32, #tpu.memory_space<vmem>>, %arg7: memref<128x128xbf16, #tpu.memory_space<vmem>>, %arg8: memref<1x128xf32, #tpu.memory_space<vmem>>, %arg9: memref<128x128xbf16, #tpu.memory_space<vmem>>, %arg10: memref<1x128xf32, #tpu.memory_space<vmem>>, %arg11: memref<128x128xbf16, #tpu.memory_space<vmem>>, %arg12: memref<1x128xf32, #tpu.memory_space<vmem>>, %arg13: memref<8x128xbf16, #tpu.memory_space<vmem>>, %arg14: memref<8x128xbf16, #tpu.memory_space<vmem>>) attributes {dimension_semantics = [#tpu.dimension_semantics<parallel>], iteration_bounds = array<i64: 2>, scalar_prefetch = 0 : i64, scratch_operands = 0 : i64, tpu.core_type = #tpu.core_type<tc>, window_params = [{transform_indices = @transform_0, window_bounds = array<i64: 8, 128>}, {transform_indices = @transform_1, window_bounds = array<i64: 8, 128>}, {pipeline_mode = #tpu.pipeline_mode<synchronous>, transform_indices = @transform_2, window_bounds = array<i64: 128, 256>}, {pipeline_mode = #tpu.pipeline_mode<synchronous>, transform_indices = @transform_3, window_bounds = array<i64: 1, 256>}, {pipeline_mode = #tpu.pipeline_mode<synchronous>, transform_indices = @transform_4, window_bounds = array<i64: 128, 128>}, {pipeline_mode = #tpu.pipeline_mode<synchronous>, transform_indices = @transform_5, window_bounds = array<i64: 1, 128>}, {pipeline_mode = #tpu.pipeline_mode<synchronous>, transform_indices = @transform_6, window_bounds = array<i64: 128, 128>}, {pipeline_mode = #tpu.pipeline_mode<synchronous>, transform_indices = @transform_7, window_bounds = array<i64: 1, 128>}, {pipeline_mode = #tpu.pipeline_mode<synchronous>, transform_indices = @transform_8, window_bounds = array<i64: 128, 128>}, {pipeline_mode = #tpu.pipeline_mode<synchronous>, transform_indices = @transform_9, window_bounds = array<i64: 1, 128>}, {pipeline_mode = #tpu.pipeline_mode<synchronous>, transform_indices = @transform_10, window_bounds = array<i64: 128, 128>}, {pipeline_mode = #tpu.pipeline_mode<synchronous>, transform_indices = @transform_11, window_bounds = array<i64: 1, 128>}, {transform_indices = @transform_12, window_bounds = array<i64: 8, 128>}, {transform_indices = @transform_13, window_bounds = array<i64: 8, 128>}]} {
    %c0 = arith.constant 0 : index
    %c0_0 = arith.constant 0 : index
    %0 = vector.load %arg1[%c0, %c0_0] : memref<8x128xbf16, #tpu.memory_space<vmem>>, vector<8x128xbf16>
    %c0_1 = arith.constant 0 : index
    %c0_2 = arith.constant 0 : index
    %1 = vector.load %arg2[%c0_1, %c0_2] : memref<8x128xbf16, #tpu.memory_space<vmem>>, vector<8x128xbf16>
    %c0_3 = arith.constant 0 : index
    %c0_4 = arith.constant 0 : index
    %2 = vector.load %arg3[%c0_3, %c0_4] : memref<128x256xbf16, #tpu.memory_space<vmem>>, vector<128x256xbf16>
    %cst = arith.constant dense<0.000000e+00> : vector<8x256xf32>
    %3 = tpu.matmul %1, %2, %cst {dimension_numbers = #tpu.dot_dimension_numbers<[1], [0], [0], [1], [0, 0, 1, 1], [], []>} : vector<8x128xbf16>, vector<128x256xbf16>, vector<8x256xf32> -> vector<8x256xf32>
    %c0_5 = arith.constant 0 : index
    %c0_6 = arith.constant 0 : index
    %4 = vector.load %arg4[%c0_5, %c0_6] : memref<1x256xf32, #tpu.memory_space<vmem>>, vector<1x256xf32>
    %5 = vector.broadcast %4 : vector<1x256xf32> to vector<8x256xf32>
    %6 = arith.addf %3, %5 : vector<8x256xf32>
    %cst_7 = arith.constant 0.000000e+00 : f32
    %7 = vector.broadcast %cst_7 : f32 to vector<8x256xf32>
    %8 = arith.maximumf %6, %7 : vector<8x256xf32>
    %c0_8 = arith.constant 0 : index
    %c0_9 = arith.constant 0 : index
    %9 = vector.load %arg5[%c0_8, %c0_9] : memref<128x128xbf16, #tpu.memory_space<vmem>>, vector<128x128xbf16>
    %cst_10 = arith.constant dense<0.000000e+00> : vector<8x128xf32>
    %10 = tpu.matmul %0, %9, %cst_10 {dimension_numbers = #tpu.dot_dimension_numbers<[1], [0], [0], [1], [0, 0, 1, 1], [], []>} : vector<8x128xbf16>, vector<128x128xbf16>, vector<8x128xf32> -> vector<8x128xf32>
    %c0_11 = arith.constant 0 : index
    %c0_12 = arith.constant 0 : index
    %11 = vector.load %arg6[%c0_11, %c0_12] : memref<1x128xf32, #tpu.memory_space<vmem>>, vector<1x128xf32>
    %12 = vector.broadcast %11 : vector<1x128xf32> to vector<8x128xf32>
    %13 = arith.addf %10, %12 : vector<8x128xf32>
    %cst_13 = arith.constant 0.000000e+00 : f32
    %14 = vector.broadcast %cst_13 : f32 to vector<8x128xf32>
    %15 = arith.maximumf %13, %14 : vector<8x128xf32>
    %16 = vector.extract_strided_slice %8 {offsets = [0, 0], sizes = [8, 128], strides = [1, 1]} : vector<8x256xf32> to vector<8x128xf32>
    %17 = arith.addf %15, %16 : vector<8x128xf32>
    %18 = arith.truncf %17 : vector<8x128xf32> to vector<8x128xbf16>
    %c0_14 = arith.constant 0 : index
    %c0_15 = arith.constant 0 : index
    %19 = vector.load %arg7[%c0_14, %c0_15] : memref<128x128xbf16, #tpu.memory_space<vmem>>, vector<128x128xbf16>
    %cst_16 = arith.constant dense<0.000000e+00> : vector<8x128xf32>
    %20 = tpu.matmul %18, %19, %cst_16 {dimension_numbers = #tpu.dot_dimension_numbers<[1], [0], [0], [1], [0, 0, 1, 1], [], []>} : vector<8x128xbf16>, vector<128x128xbf16>, vector<8x128xf32> -> vector<8x128xf32>
    %c0_17 = arith.constant 0 : index
    %c0_18 = arith.constant 0 : index
    %21 = vector.load %arg8[%c0_17, %c0_18] : memref<1x128xf32, #tpu.memory_space<vmem>>, vector<1x128xf32>
    %22 = vector.broadcast %21 : vector<1x128xf32> to vector<8x128xf32>
    %23 = arith.addf %20, %22 : vector<8x128xf32>
    %cst_19 = arith.constant 0.000000e+00 : f32
    %24 = vector.broadcast %cst_19 : f32 to vector<8x128xf32>
    %25 = arith.maximumf %23, %24 : vector<8x128xf32>
    %26 = arith.truncf %25 : vector<8x128xf32> to vector<8x128xbf16>
    %c0_20 = arith.constant 0 : index
    %c0_21 = arith.constant 0 : index
    %27 = vector.load %arg13[%c0_20, %c0_21] : memref<8x128xbf16, #tpu.memory_space<vmem>>, vector<8x128xbf16>
    tpu.vector_store %arg13[%c0_20, %c0_21], %26 {strides = array<i32>} : memref<8x128xbf16, #tpu.memory_space<vmem>>, vector<8x128xbf16>,
    %28 = arith.truncf %25 : vector<8x128xf32> to vector<8x128xbf16>
    %c0_22 = arith.constant 0 : index
    %c0_23 = arith.constant 0 : index
    %29 = vector.load %arg9[%c0_22, %c0_23] : memref<128x128xbf16, #tpu.memory_space<vmem>>, vector<128x128xbf16>
    %cst_24 = arith.constant dense<0.000000e+00> : vector<8x128xf32>
    %30 = tpu.matmul %28, %29, %cst_24 {dimension_numbers = #tpu.dot_dimension_numbers<[1], [0], [0], [1], [0, 0, 1, 1], [], []>} : vector<8x128xbf16>, vector<128x128xbf16>, vector<8x128xf32> -> vector<8x128xf32>
    %c0_25 = arith.constant 0 : index
    %c0_26 = arith.constant 0 : index
    %31 = vector.load %arg10[%c0_25, %c0_26] : memref<1x128xf32, #tpu.memory_space<vmem>>, vector<1x128xf32>
    %32 = vector.broadcast %31 : vector<1x128xf32> to vector<8x128xf32>
    %33 = arith.addf %30, %32 : vector<8x128xf32>
    %cst_27 = arith.constant 0.000000e+00 : f32
    %34 = vector.broadcast %cst_27 : f32 to vector<8x128xf32>
    %35 = arith.maximumf %33, %34 : vector<8x128xf32>
    %36 = vector.extract_strided_slice %8 {offsets = [0, 128], sizes = [8, 128], strides = [1, 1]} : vector<8x256xf32> to vector<8x128xf32>
    %37 = arith.addf %35, %36 : vector<8x128xf32>
    %38 = arith.truncf %37 : vector<8x128xf32> to vector<8x128xbf16>
    %c0_28 = arith.constant 0 : index
    %c0_29 = arith.constant 0 : index
    %39 = vector.load %arg11[%c0_28, %c0_29] : memref<128x128xbf16, #tpu.memory_space<vmem>>, vector<128x128xbf16>
    %cst_30 = arith.constant dense<0.000000e+00> : vector<8x128xf32>
    %40 = tpu.matmul %38, %39, %cst_30 {dimension_numbers = #tpu.dot_dimension_numbers<[1], [0], [0], [1], [0, 0, 1, 1], [], []>} : vector<8x128xbf16>, vector<128x128xbf16>, vector<8x128xf32> -> vector<8x128xf32>
    %c0_31 = arith.constant 0 : index
    %c0_32 = arith.constant 0 : index
    %41 = vector.load %arg12[%c0_31, %c0_32] : memref<1x128xf32, #tpu.memory_space<vmem>>, vector<1x128xf32>
    %42 = vector.broadcast %41 : vector<1x128xf32> to vector<8x128xf32>
    %43 = arith.addf %40, %42 : vector<8x128xf32>
    %cst_33 = arith.constant 0.000000e+00 : f32
    %44 = vector.broadcast %cst_33 : f32 to vector<8x128xf32>
    %45 = arith.maximumf %43, %44 : vector<8x128xf32>
    %46 = arith.truncf %45 : vector<8x128xf32> to vector<8x128xbf16>
    %c0_34 = arith.constant 0 : index
    %c0_35 = arith.constant 0 : index
    %47 = vector.load %arg14[%c0_34, %c0_35] : memref<8x128xbf16, #tpu.memory_space<vmem>>, vector<8x128xbf16>
    tpu.vector_store %arg14[%c0_34, %c0_35], %46 {strides = array<i32>} : memref<8x128xbf16, #tpu.memory_space<vmem>>, vector<8x128xbf16>,
    return
  }
  func.func @transform_0(%arg0: i32) -> (i32, i32) {
    %c0_i32 = arith.constant 0 : i32
    %c0_i32_0 = arith.constant 0 : i32
    return %arg0, %c0_i32 : i32, i32
  }
  func.func @transform_1(%arg0: i32) -> (i32, i32) {
    %c0_i32 = arith.constant 0 : i32
    %c0_i32_0 = arith.constant 0 : i32
    return %arg0, %c0_i32 : i32, i32
  }
  func.func @transform_2(%arg0: i32) -> (i32, i32) {
    %c0_i32 = arith.constant 0 : i32
    %c0_i32_0 = arith.constant 0 : i32
    %c0_i32_1 = arith.constant 0 : i32
    return %c0_i32, %c0_i32_0 : i32, i32
  }
  func.func @transform_3(%arg0: i32) -> (i32, i32) {
    %c0_i32 = arith.constant 0 : i32
    %c0_i32_0 = arith.constant 0 : i32
    %c0_i32_1 = arith.constant 0 : i32
    return %c0_i32, %c0_i32_0 : i32, i32
  }
  func.func @transform_4(%arg0: i32) -> (i32, i32) {
    %c0_i32 = arith.constant 0 : i32
    %c0_i32_0 = arith.constant 0 : i32
    %c0_i32_1 = arith.constant 0 : i32
    return %c0_i32, %c0_i32_0 : i32, i32
  }
  func.func @transform_5(%arg0: i32) -> (i32, i32) {
    %c0_i32 = arith.constant 0 : i32
    %c0_i32_0 = arith.constant 0 : i32
    %c0_i32_1 = arith.constant 0 : i32
    return %c0_i32, %c0_i32_0 : i32, i32
  }
  func.func @transform_6(%arg0: i32) -> (i32, i32) {
    %c0_i32 = arith.constant 0 : i32
    %c0_i32_0 = arith.constant 0 : i32
    %c0_i32_1 = arith.constant 0 : i32
    return %c0_i32, %c0_i32_0 : i32, i32
  }
  func.func @transform_7(%arg0: i32) -> (i32, i32) {
    %c0_i32 = arith.constant 0 : i32
    %c0_i32_0 = arith.constant 0 : i32
    %c0_i32_1 = arith.constant 0 : i32
    return %c0_i32, %c0_i32_0 : i32, i32
  }
  func.func @transform_8(%arg0: i32) -> (i32, i32) {
    %c0_i32 = arith.constant 0 : i32
    %c0_i32_0 = arith.constant 0 : i32
    %c0_i32_1 = arith.constant 0 : i32
    return %c0_i32, %c0_i32_0 : i32, i32
  }
  func.func @transform_9(%arg0: i32) -> (i32, i32) {
    %c0_i32 = arith.constant 0 : i32
    %c0_i32_0 = arith.constant 0 : i32
    %c0_i32_1 = arith.constant 0 : i32
    return %c0_i32, %c0_i32_0 : i32, i32
  }
  func.func @transform_10(%arg0: i32) -> (i32, i32) {
    %c0_i32 = arith.constant 0 : i32
    %c0_i32_0 = arith.constant 0 : i32
    %c0_i32_1 = arith.constant 0 : i32
    return %c0_i32, %c0_i32_0 : i32, i32
  }
  func.func @transform_11(%arg0: i32) -> (i32, i32) {
    %c0_i32 = arith.constant 0 : i32
    %c0_i32_0 = arith.constant 0 : i32
    %c0_i32_1 = arith.constant 0 : i32
    return %c0_i32, %c0_i32_0 : i32, i32
  }
  func.func @transform_12(%arg0: i32) -> (i32, i32) {
    %c0_i32 = arith.constant 0 : i32
    %c0_i32_0 = arith.constant 0 : i32
    return %arg0, %c0_i32 : i32, i32
  }
  func.func @transform_13(%arg0: i32) -> (i32, i32) {
    %c0_i32 = arith.constant 0 : i32
    %c0_i32_0 = arith.constant 0 : i32
    return %arg0, %c0_i32 : i32, i32
  }
}

</mosaic_0001>

<bundles_post_ra>
// kernel: tpu_custom_call.1
= control target key start
LH: loop header
LB: loop body
LE: loop exit
PB: predicated region body
PF: predicated region fallthrough
CT: control target
= control target key end

     0   :  { %s2486_s0 = inlined_call_operand.hbm [shape: bf16[16,128], index: 0, kind: input, shape index: {}]   ;;  %s2487_s1 = inlined_call_operand.hbm [shape: bf16[16,128], index: 1, kind: input, shape index: {}]   ;;  %s2488_s2 = inlined_call_operand.hbm [shape: bf16[128,256], index: 2, kind: input, shape index: {}]   ;;  %s2489_s3 = inlined_call_operand.vmem [shape: f32[1,256], index: 3, kind: input, shape index: {}]   ;;  %s2490_s4 = inlined_call_operand.hbm [shape: bf16[128,128], index: 4, kind: input, shape index: {}]   ;;  %s2491_s5 = inlined_call_operand.vmem [shape: f32[1,128], index: 5, kind: input, shape index: {}]   ;;  %s2492_s6 = inlined_call_operand.hbm [shape: bf16[128,128], index: 6, kind: input, shape index: {}]   ;;  %s2493_s7 = inlined_call_operand.vmem [shape: f32[1,128], index: 7, kind: input, shape index: {}]   ;;  %s2494_s8 = inlined_call_operand.hbm [shape: bf16[128,128], index: 8, kind: input, shape index: {}]   ;;  %s2495_s9 = inlined_call_operand.vmem [shape: f32[1,128], index: 9, kind: input, shape index: {}]   ;;  %s2496_s10 = inlined_call_operand.hbm [shape: bf16[128,128], index: 10, kind: input, shape index: {}]   ;;  %s2497_s11 = inlined_call_operand.vmem [shape: f32[1,128], index: 11, kind: input, shape index: {}]   ;;  %s2498_s12 = inlined_call_operand.hbm [shape: bf16[16,128], index: 12, kind: output, shape index: {0}]   ;;  %s2499_s13 = inlined_call_operand.hbm [shape: bf16[16,128], index: 13, kind: output, shape index: {1}]  }
   0x1   :  { %2509 = sst [smem:[#allocation28_spill]] %s2488_s2 }
   0x2   :  { %2510 = sst [smem:[#allocation29_spill]] %s2490_s4 }
   0x3   :  { %2511 = sst [smem:[#allocation30_spill]] %s2492_s6 }
   0x4   :  { %2512 = sst [smem:[#allocation31_spill]] %s2494_s8 }
   0x5   :  { %2513 = sst [smem:[#allocation32_spill]] %s2496_s10 }
   0x6   :  { %2514 = sst [smem:[#allocation33_spill]] %s2499_s13 }
   0x7   :  { %19 = vsyncpa [#allocation3], 0 }
   0x8   :  { %21 = vsyncpa [#allocation3 + $0x1], 0 }
   0x9   :  { %22 = vsyncpa [#allocation6], 0 }
   0xa   :  { %24 = vsyncpa [#allocation6 + $0x1], 0 }
   0xb   :  { %25 = vsyncpa [#allocation9], 0 }
   0xc   :  { %26 = vsyncpa [#allocation12], 0 }
   0xd   :  { %27 = vsyncpa [#allocation4], 0 }
   0xe   :  { %29 = vsyncpa [#allocation4 + $0x1], 0 }
   0xf   :  { %30 = vsyncpa [#allocation16], 0 }
  0x10   :  { %32 = vsyncpa [#allocation16 + $0x1], 0  ;;  %s2140_s25 = smov 0   ;;  %s2142_s26 = smov 0  }
  0x11   :  { %s2144_s27 = smov 0   ;;  %s2146_s28 = smov 0  }
  0x12 LB: > { %2515 = sst [smem:[#allocation24_spill]] %s2048_s27  ;;  %s2054_s29 = smov [#allocation7]   ;;  %s2052_s28 = sphi %s2146_s28, %s2544_s28   ;;  %s2048_s27 = sphi %s2144_s27, %s2546_s27   ;;  %s2044_s26 = sphi %s2142_s26, %s2548_s26   ;;  %s2040_s25 = sphi %s2140_s25, %s2547_s25  }
  0x13   : > { %s369_s30 = sshll.u32 %s2054_s29, 4  ;;  %s2161_s14 = sadd.s32 4294967295, %s2052_s28   ;;  %s370_s30 = int_to_ptr.vmem [resolvable:$true] %s369_s30 }
  0x14   : > { %p1391_p0 = scmp.ge.s32.totalorder %s2052_s28, 1  ;;  %p2505_p1 = scmp.eq.s32.totalorder %s2161_s14, 0 }
  0x15   : > { %p357_p2 = scmp.lt.s32.totalorder %s2052_s28, 3  ;;  %s2055_s16 = smov [#allocation8]  }
  0x16   : > { %s385_s17 = sshll.u32 %s2055_s16, 4  ;;  %s2056_s19 = smov [#allocation11]   ;;  %s2179_s17 = int_to_ptr.vmem [resolvable:$true] %s385_s17 }
  0x17   : > { %p2166_p3 = pnand %p1391_p0, %p357_p2  ;;  %s2181_s20 = sshll.u32 %s2056_s19, 4  ;;  %s418_s20 = int_to_ptr.vmem [resolvable:$true] %s2181_s20 }
  0x18   : > { %s1767_s22 = scalar_lea.vmem %s370_s30, 2048  ;;  %p1775_p11 = scmp.lt.s32.totalorder %s370_s30, %s370_s30 }
  0x19   : > { %s2516_s15 = scalar_select %p2166_p3, 1, 0 }
  0x1a   : > { %p1614_p5 = pneg %p2166_p3  ;;  %p1768_p8 = scmp.ne.s32.totalorder %s370_s30, %s1767_s22 }
  0x1b   : > { %p1776_p12 = scmp.lt.s32.totalorder %s1767_s22, %s1767_s22 }
  0x1c   : > { %p2175_p6 = pnand %p1614_p5, %p2505_p1 }
  0x1d   : > { %p1777_p13 = por %p1776_p12, %p1775_p11 }
  0x1e   : > { %p2185_p7 = pneg %p2175_p6 }
  0x20   : > { %p1770_p9 = pnand %p1768_p8, %p2185_p7 }
  0x22   : > { %p1771_p10 = pneg %p1770_p9 }
  0x24   : > { %p1778_p0 = pnand %p1777_p13, %p1771_p10 }
  0x26   : > { %1781 = shalt.err (!%p1778_p0)
}
  0x27   : > { %s2057_s23 = smov 128   ;;  %s2058_s24 = smov 8  }
  0x28   : > { %s2519_s2 = sld [smem:[#allocation28_spill]]  ;;  %s1793_s19 = scalar_lea.vmem %s2179_s17, 1024 }
  0x29   : > { %p1794_p2 = scmp.ne.s32.totalorder %s2179_s17, %s1793_s19  ;;  %p1801_p9 = scmp.lt.s32.totalorder %s2179_s17, %s2179_s17 }
  0x2a   : > { %p1802_p10 = scmp.lt.s32.totalorder %s1793_s19, %s1793_s19 }
  0x2b   : > { %p1796_p5 = pnand %p1794_p2, %p2185_p7 }
  0x2c   : > { %p1803_p11 = por %p1802_p10, %p1801_p9 }
  0x2d   : > { %p1797_p8 = pneg %p1796_p5 }
  0x2e   : > { %1617 = dma.hbm_to_vmem [thread:$0]  (!%p2175_p6), %s2519_s2, 2048, %s370_s30, [#allocation6], %s2057_s23, %s2057_s23, %s2058_s24  }
  0x2f   : > { %p1804_p12 = pnand %p1803_p11, %p1797_p8 }
  0x31   : > { %1807 = shalt.err (!%p1804_p12)
}
  0x32   : > { %s2059_s22 = smov 64   ;;  %s2060_s13 = smov 4  }
  0x33   : > { %s2520_s4 = sld [smem:[#allocation29_spill]]  ;;  %s1819_s24 = scalar_lea.vmem %s418_s20, 1024 }
  0x34   : > { %p1820_p13 = scmp.ne.s32.totalorder %s418_s20, %s1819_s24  ;;  %p1827_p5 = scmp.lt.s32.totalorder %s418_s20, %s418_s20 }
  0x35   : > { %p1828_p8 = scmp.lt.s32.totalorder %s1819_s24, %s1819_s24 }
  0x36   : > { %p1822_p0 = pnand %p1820_p13, %p2185_p7 }
  0x37   : > { %p1829_p9 = por %p1828_p8, %p1827_p5 }
  0x38   : > { %p1823_p2 = pneg %p1822_p0 }
  0x39   : > { %1620 = dma.hbm_to_vmem [thread:$0]  (!%p2175_p6), %s2520_s4, 1024, %s2179_s17, [#allocation9], %s2059_s22, %s2059_s22, %s2060_s13  }
  0x3a   : > { %p1830_p10 = pnand %p1829_p9, %p1823_p2 }
  0x3c   : > { %1833 = shalt.err (!%p1830_p10)
}
  0x3d   : > { %s2521_s8 = sld [smem:[#allocation31_spill]]  ;;  %s2061_s17 = smov [#allocation10]  }
  0x3e   : > { %s401_s19 = sshll.u32 %s2061_s17, 4  ;;  %s2062_s30 = smov [#allocation13]   ;;  %s402_s19 = int_to_ptr.vmem [resolvable:$true] %s401_s19 }
  0x3f   : > { %s433_s23 = sshll.u32 %s2062_s30, 4  ;;  %s1845_s2 = scalar_lea.vmem %s402_s19, 1024  ;;  %s434_s23 = int_to_ptr.vmem [resolvable:$true] %s433_s23 }
  0x40   : > { %p1846_p11 = scmp.ne.s32.totalorder %s402_s19, %s1845_s2  ;;  %p1853_p0 = scmp.lt.s32.totalorder %s402_s19, %s402_s19 }
  0x41   : > { %p1854_p2 = scmp.lt.s32.totalorder %s1845_s2, %s1845_s2 }
  0x42   : > { %p1848_p12 = pnand %p1846_p11, %p2185_p7 }
  0x43   : > { %1626 = dma.hbm_to_vmem [thread:$0]  (!%p2175_p6), %s2521_s8, 1024, %s418_s20, [#allocation12], %s2059_s22, %s2059_s22, %s2060_s13  }
  0x44   : > { %p1849_p13 = pneg %p1848_p12  ;;  %p1855_p5 = por %p1854_p2, %p1853_p0 }
  0x46   : > { %p1856_p8 = pnand %p1855_p5, %p1849_p13 }
  0x48   : > { %1859 = shalt.err (!%p1856_p8)
}
  0x49   : > { %s2522_s6 = sld [smem:[#allocation30_spill]]  ;;  %s1871_s29 = scalar_lea.vmem %s434_s23, 1024 }
  0x4a   : > { %p1872_p9 = scmp.ne.s32.totalorder %s434_s23, %s1871_s29  ;;  %p1879_p12 = scmp.lt.s32.totalorder %s434_s23, %s434_s23 }
  0x4b   : > { %p1880_p0 = scmp.lt.s32.totalorder %s1871_s29, %s1871_s29 }
  0x4c   : > { %p1874_p10 = pnand %p1872_p9, %p2185_p7 }
  0x4d   : > { %p1881_p13 = por %p1880_p0, %p1879_p12 }
  0x4e   : > { %p1875_p11 = pneg %p1874_p10 }
  0x4f   : > { %1623 = dma.hbm_to_vmem [thread:$0]  (!%p2175_p6), %s2522_s6, 1024, %s402_s19, [#allocation9], %s2059_s22, %s2059_s22, %s2060_s13  }
  0x50   : > { %p1882_p2 = pnand %p1881_p13, %p1875_p11 }
  0x52   : > { %1885 = shalt.err (!%p1882_p2)
}
  0x53   : > { %s2523_s10 = sld [smem:[#allocation32_spill]]  ;;  %s1390_s18 = sadd.s32 4294967294, %s2052_s28  }
  0x54   : > { %s2244_s21 = sadd.s32 1, %s2052_s28   ;;  %s45_s17 = sadd.s32 1, %s2048_s27 }
  0x55   : > { %2524 = sst [smem:[#allocation25_spill]] %s2244_s21  ;;  %s42_s19 = ssub.s32 %s2052_s28, %s2244_s21 }
  0x56   : > { %p52_p7 = scmp.ne.s32.totalorder %s2048_s27, %s2044_s26  ;;  %p43_p5 = scmp.eq.s32.totalorder %s42_s19, 0 }
  0x57   : > { %p53_p8 = scmp.eq.s32.totalorder %s2052_s28, 0  ;;  %p58_p9 = scmp.ne.s32.totalorder %s2044_s26, %s2040_s25 }
  0x58   : > { %p318_p10 = scmp.eq.s32.totalorder %s2161_s14, 1  ;;  %p324_p0 = scmp.eq.s32.totalorder %s1390_s18, 1 }
  0x59   : > { %1629 = dma.hbm_to_vmem [thread:$0]  (!%p2175_p6), %s2523_s10, 1024, %s434_s23, [#allocation12], %s2059_s22, %s2059_s22, %s2060_s13  }
  0x5a   : > { %s2256_s30 = scalar_select %p43_p5, %s2048_s27, %s45_s17  }
  0x5b   : > { %p54_p11 = por %p53_p8, %p52_p7  ;;  %p2260_p12 = por %p2505_p1, %p58_p9 }
  0x5c   : > { %2525 = sst [smem:[#allocation26_spill]] %s2256_s30  ;;  %p2264_p6 = por %p318_p10, %p52_p7 }
  0x5d   : > { %s2526_s20 = scalar_select %p2260_p12, 1, 0 }
  0x5e   : > { %s2527_s13 = scalar_select %p2264_p6, 1, 0 }
  0x5f   : > { %p1649_p13 = scmp.lt.s32.totalorder %s2052_s28, 2  ;;  %s450_s22 = sand.u32 1, %s2048_s27  }
  0x60   : > { %p2270_p2 = por %p324_p0, %p58_p9  ;;  %s2274_s24 = sshll.u32 %s450_s22, 2 }
  0x61   : > { %s1399_s29 = sshll.u32 %s2052_s28, 6  ;;  %s454_s19 = scalar_lea.vmem [#allocation2], %s2274_s24 }
  0x62   : > { %s2528_s23 = scalar_select %p2270_p2, 1, 0 }
  0x63   : > { %s2280_s17 = scalar_lea.hbm %s2486_s0, %s1399_s29  ;;  %s461_s18 = sshll.u32 %s454_s19, 4  ;;  %s462_s18 = int_to_ptr.vmem [resolvable:$true] %s461_s18 }
  0x64   : > { %2529 = sst [smem:[#allocation27_spill]] %s2528_s23  ;;  %p2283_p7 = pnand %p1649_p13, %p54_p11 }
  0x65   : > { %s2290_s10 = scalar_lea.hbm %s2487_s1, %s1399_s29  ;;  %s451_s2 = scalar_lea.sflag [#allocation3], %s450_s22 }
  0x66   : > { %s1886_s16 = scalar_lea.hbm %s2280_s17, 64  ;;  %p1888_p8 = pneg %p2283_p7 }
  0x67   : > { %p1887_p5 = scmp.ne.s32.totalorder %s2280_s17, %s1886_s16  ;;  %s1891_s27 = scalar_lea.hbm %s2486_s0, 128 }
  0x68   : > { %p1892_p11 = scmp.lt.s32.totalorder %s2280_s17, %s2486_s0  ;;  %p1893_p0 = scmp.lt.s32.totalorder %s1891_s27, %s1886_s16 }
  0x69   : > { %p1889_p9 = pnand %p1888_p8, %p1887_p5 }
  0x6a   : > { %p1894_p13 = por %p1893_p0, %p1892_p11 }
  0x6b   : > { %p1890_p10 = pneg %p1889_p9 }
  0x6d   : > { %p1895_p4 = pnand %p1894_p13, %p1890_p10 }
  0x6f   : > { %1898 = shalt.err (!%p1895_p4)
}
  0x70   : > { %s1899_s6 = scalar_lea.vmem %s462_s18, 64  ;;  %s2063_s8 = smov [#allocation2]  }
  0x71   : > { %p1900_p1 = scmp.ne.s32.totalorder %s462_s18, %s1899_s6  ;;  %s1904_s22 = sshll.u32 %s2063_s8, 4  ;;  %s1905_s22 = int_to_ptr.vmem [resolvable:$false] %s1904_s22 }
  0x72   : > { %s1906_s30 = scalar_lea.vmem %s1905_s22, 128  ;;  %p1907_p9 = scmp.lt.s32.totalorder %s462_s18, %s1905_s22 }
  0x73   : > { %p1902_p2 = pnand %p1900_p1, %p1888_p8  ;;  %p1908_p6 = scmp.lt.s32.totalorder %s1906_s30, %s1899_s6 }
  0x75   : > { %p1903_p5 = pneg %p1902_p2  ;;  %p1909_p12 = por %p1908_p6, %p1907_p9 }
  0x77   : > { %p1910_p3 = pnand %p1909_p12, %p1903_p5 }
  0x79   : > { %1913 = shalt.err (!%p1910_p3)
}
  0x7a   : > { %1633 = dma.hbm_to_vmem [thread:$0]  (!%p2283_p7), %s2280_s17, 64, %s462_s18, %s451_s2  }
  0x7b   : > { %s468_s27 = sand.u32 1, %s2052_s28   ;;  %s472_s21 = scalar_lea.vmem [#allocation5], %s2274_s24 }
  0x7c   : > { %s479_s23 = sshll.u32 %s472_s21, 4  ;;  %s469_s29 = scalar_lea.sflag [#allocation6], %s468_s27  ;;  %s480_s23 = int_to_ptr.vmem [resolvable:$true] %s479_s23 }
  0x7d   : > { %s1914_s16 = scalar_lea.hbm %s2290_s10, 64  ;;  %s1919_s8 = scalar_lea.hbm %s2487_s1, 128 }
  0x7e   : > { %p1915_p1 = scmp.ne.s32.totalorder %s2290_s10, %s1914_s16  ;;  %p1920_p12 = scmp.lt.s32.totalorder %s2290_s10, %s2487_s1 }
  0x7f   : > { %p1921_p6 = scmp.lt.s32.totalorder %s1919_s8, %s1914_s16 }
  0x80   : > { %p1917_p3 = pnand %p1915_p1, %p1888_p8 }
  0x81   : > { %p1922_p2 = por %p1921_p6, %p1920_p12 }
  0x82   : > { %p1918_p4 = pneg %p1917_p3 }
  0x84   : > { %p1923_p10 = pnand %p1922_p2, %p1918_p4 }
  0x86   : > { %1926 = shalt.err (!%p1923_p10)
}
  0x87   : > { %s1927_s24 = scalar_lea.vmem %s480_s23, 64  ;;  %s2064_s17 = smov [#allocation5]  }
  0x88   : > { %p1928_p11 = scmp.ne.s32.totalorder %s480_s23, %s1927_s24  ;;  %s1932_s18 = sshll.u32 %s2064_s17, 4  ;;  %s1933_s18 = int_to_ptr.vmem [resolvable:$false] %s1932_s18 }
  0x89   : > { %s1934_s2 = scalar_lea.vmem %s1933_s18, 128  ;;  %p1935_p5 = scmp.lt.s32.totalorder %s480_s23, %s1933_s18 }
  0x8a   : > { %p1930_p0 = pnand %p1928_p11, %p1888_p8  ;;  %p1936_p9 = scmp.lt.s32.totalorder %s1934_s2, %s1927_s24 }
  0x8c   : > { %p1931_p13 = pneg %p1930_p0  ;;  %p1937_p1 = por %p1936_p9, %p1935_p5 }
  0x8e   : > { %p1938_p3 = pnand %p1937_p1, %p1931_p13 }
  0x90   : > { %1941 = shalt.err (!%p1938_p3)
}
  0x91   : > { %1636 = dma.hbm_to_vmem [thread:$0]  (!%p2283_p7), %s2290_s10, 64, %s480_s23, %s469_s29  }
  0x92   : > { %p2531_p4 = scmp.ne.s32.totalorder %s2516_s15, 0 }
  0x93   : > { %s2335_s27 = sand.u32 (!%p2531_p4), 1, %s2044_s26   ;;  %p2532_p8 = scmp.ne.s32.totalorder (!%p2531_p4), %s2526_s20, 0 }
  0x94   : > { %488 = sbr.rel (%p2531_p4) target bundleno = 1014 (0x3f6), region = 68  ;;  %s2338_s21 = sshll.u32 (!%p2531_p4), %s2335_s27, 2 }
  0x95   : > { %s491_s16 = scalar_lea.sflag (!%p2531_p4), [#allocation3], %s2335_s27  ;;  %s494_s19 = scalar_lea.vmem (!%p2531_p4), [#allocation2], %s2338_s21 }
  0x99   : > { %2011 = dma.done.wait (%p2532_p8), %s491_s16, 64  }
  0x9a   : > { %2013 = vsyncadd (%p2532_p8), %s491_s16, 4294967232  ;;  %s499_s4 = sand.u32 1, %s2161_s14   ;;  %s503_s15 = scalar_lea.vmem [#allocation5], %s2338_s21 }
  0x9b   : > { %s500_s10 = scalar_lea.sflag [#allocation6], %s499_s4 }
  0x9c   : > { %2015 = dma.done.wait (%p2532_p8), %s500_s10, 64  }
  0x9d   : > { %2017 = vsyncadd (%p2532_p8), %s500_s10, 4294967232  ;;  %p2533_p7 = scmp.eq.s32.totalorder %s2161_s14, 0 }
  0x9f   : > { %2019 = dma.done.wait (%p2533_p7), [#allocation6], 2048   ;;  %p2534_p12 = pmov %p2533_p7 }
  0xa0   : > { %p2535_p6 = pmov %p2533_p7 }
  0xa1   : > { %2021 = vsyncadd (%p2534_p12), [#allocation6], 4294965248 }
  0xa2   : > { %2023 = dma.done.wait (%p2535_p6), [#allocation9], 2048   ;;  %p2536_p2 = pmov %p2535_p6 }
  0xa4   : > { %2025 = vsyncadd (%p2536_p2), [#allocation9], 4294965248  ;;  %p2537_p10 = pmov %p2536_p2 }
  0xa5   : > { %p2538_p11 = pmov %p2536_p2 }
  0xa6   : > { %2027 = dma.done.wait (%p2537_p10), [#allocation12], 2048  }
  0xa7   : > { %2029 = vsyncadd (%p2538_p11), [#allocation12], 4294965248  ;;  %v2065_v0 = vmov 0.0   ;;  %vm2066_vm0 = vmmov 0   ;;  %v2067_v1 = vmov 0   ;;  %v1702_v3 = vld [vmem:[#allocation8 + $0x38] sm:$0xff]   ;;  %v597_v34 = vlaneseq }
  0xa8   : > { %1506 = vmatprep.subr.bf16.mxu1 %v2065_v0  ;;  %1522 = vmatprep.mubr.msk.bf16.mxu1 %vm2066_vm0, %v2065_v0  ;;  %v1700_v2 = vld [vmem:[#allocation7 + $0x74] ss:$8 sps:$4 sm:$0xff]   ;;  %v1703_v4 = vld [vmem:[#allocation7 + $0x70] ss:$8 sps:$4 sm:$0xff]   ;;  %v1704_v5 = vld [vmem:[#allocation7 + $0x64] ss:$8 sps:$4 sm:$0xff]  }
  0xa9   : > { %719 = vmatprep.mubr.bf16.mxu0 %v2067_v1  ;;  %687 = vmatprep.subr.bf16.mxu0 %v1700_v2  ;;  %v1706_v6 = vld [vmem:[#allocation8 + $0x30] sm:$0xff]   ;;  %v1707_v7 = vld [vmem:[#allocation7 + $0x60] ss:$8 sps:$4 sm:$0xff]   ;;  %v1712_v11 = vld [vmem:[#allocation7 + $0x44] ss:$8 sps:$4 sm:$0xff]   ;;  %v598_v35 = vshrl.u32 %v597_v34, 7 }
  0xaa   : > { %1507 = vmatpush3.bf16.msra.mxu1 %v1702_v3  ;;  %688 = vmatpush1.bf16.msra.mxu0 %v1703_v4  ;;  %v1708_v8 = vld [vmem:[#allocation7 + $0x54] ss:$8 sps:$4 sm:$0xff]   ;;  %v1710_v9 = vld [vmem:[#allocation8 + $0x28] sm:$0xff]   ;;  %v1711_v10 = vld [vmem:[#allocation7 + $0x50] ss:$8 sps:$4 sm:$0xff]   ;;  %s568_s30 = scalar_lea.vmem [#allocation14], %s2338_s21 }
  0xab   : > { %1508 = vmatprep.subr.bf16.mxu1 %v2065_v0  ;;  %689 = vmatprep.subr.bf16.mxu0 %v1704_v5  ;;  %v1714_v12 = vld [vmem:[#allocation8 + $0x20] sm:$0xff]   ;;  %v1716_v14 = vld [vmem:[#allocation7 + $0x34] ss:$8 sps:$4 sm:$0xff]   ;;  %v1719_v16 = vld [vmem:[#allocation7 + $0x30] ss:$8 sps:$4 sm:$0xff]   ;;  %v603_v36 = vsub.s32 1, %v598_v35 }
  0xac   : > { %v1715_v13 = vld [vmem:[#allocation7 + $0x40] ss:$8 sps:$4 sm:$0xff]   ;;  %v1718_v15 = vld [vmem:[#allocation8 + $0x18] sm:$0xff]   ;;  %v1720_v17 = vld [vmem:[#allocation7 + $0x24] ss:$8 sps:$4 sm:$0xff]   ;;  %v599_v47 = vsub.s32 0, %v598_v35 }
  0xad   : > { %v1722_v18 = vld [vmem:[#allocation8 + $0x10] sm:$0xff]   ;;  %v1723_v19 = vld [vmem:[#allocation7 + $0x20] ss:$8 sps:$4 sm:$0xff]   ;;  %v1728_v23 = vld [vmem:[#allocation7 + $0x4] ss:$8 sps:$4 sm:$0xff]   ;;  %s1466_s18 = sshll.u32 %s2161_s14, 6 }
  0xae   : > { %1509 = vmatpush3.bf16.msra.mxu1 %v1706_v6  ;;  %690 = vmatpush1.bf16.msra.mxu0 %v1707_v7  ;;  %v1724_v20 = vld [vmem:[#allocation7 + $0x14] ss:$8 sps:$4 sm:$0xff]   ;;  %v1726_v21 = vld [vmem:[#allocation8 + $0x8] sm:$0xff]   ;;  %v1727_v22 = vld [vmem:[#allocation7 + $0x10] ss:$8 sps:$4 sm:$0xff]   ;;  %s1205_s4 = sshll.u32 %s568_s30, 4  ;;  %s1206_s4 = int_to_ptr.vmem [resolvable:$true] %s1205_s4 }
  0xaf   : > { %1510 = vmatprep.subr.bf16.mxu1 %v2065_v0  ;;  %691 = vmatprep.subr.bf16.mxu0 %v1708_v8  ;;  %v1730_v24 = vld [vmem:[#allocation8] sm:$0xff]   ;;  %v577_v26 = vld [vmem:[%s494_s19] sm:$0xf]  ;;  %v578_v27 = vld [vmem:[%s503_s15] sm:$0xf]  ;;  %s1203_s19 = scalar_lea.hbm %s2498_s12, %s1466_s18  ;;  %s1187_s10 = scalar_lea.sflag [#allocation4], %s2335_s27 }
  0xb0   : > { %v1731_v25 = vld [vmem:[#allocation7] ss:$8 sps:$4 sm:$0xff]   ;;  %v1732_v28 = vld [vmem:[#allocation10 + $0x38] sm:$0xff]   ;;  %v1733_v29 = vld [vmem:[#allocation10 + $0x30] sm:$0xff]   ;;  %s1942_s15 = scalar_lea.vmem %s1206_s4, 64  ;;  %p2539_p13 = scmp.ne.s32.totalorder %s2527_s13, 0 }
  0xb1   : > { %v1734_v30 = vld [vmem:[#allocation10 + $0x28] sm:$0xff]   ;;  %v1735_v31 = vld [vmem:[#allocation10 + $0x20] sm:$0xff]   ;;  %v1736_v32 = vld [vmem:[#allocation10 + $0x18] sm:$0xff]   ;;  %p1943_p0 = scmp.ne.s32.totalorder %s1206_s4, %s1942_s15  ;;  %s2068_s20 = smov [#allocation14]  }
  0xb2   : > { %1511 = vmatpush3.bf16.msra.mxu1 %v1710_v9  ;;  %692 = vmatpush1.bf16.msra.mxu0 %v1711_v10  ;;  %v1737_v33 = vld [vmem:[#allocation10 + $0x10] sm:$0xff]   ;;  %v1738_v38 = vld [vmem:[#allocation10 + $0x8] sm:$0xff]   ;;  %v1739_v40 = vld [vmem:[#allocation10] sm:$0xff]   ;;  %s1946_s23 = sshll.u32 %s2068_s20, 4  ;;  %s1947_s23 = int_to_ptr.vmem [resolvable:$false] %s1946_s23 }
  0xb3   : > { %1512 = vmatprep.subr.bf16.mxu1 %v2065_v0  ;;  %693 = vmatprep.subr.bf16.mxu0 %v1712_v11  ;;  %v595_v37 = vld [vmem:[%s2489_s3] sm:$0x3]  ;;  %v1740_v41 = vld [vmem:[#allocation11 + $0x38] sm:$0xff]   ;;  %v1742_v43 = vld [vmem:[#allocation11 + $0x28] sm:$0xff]   ;;  %p1944_p5 = pnand %p1943_p0, %p2539_p13  ;;  %s1948_s29 = scalar_lea.vmem %s1947_s23, 128 }
  0xb4   : > { %v604_v39 = vrot.slane %v595_v37, %v603_v36  ;;  %v1741_v42 = vld [vmem:[#allocation11 + $0x30] sm:$0xff]   ;;  %v1743_v44 = vld [vmem:[#allocation11 + $0x20] sm:$0xff]   ;;  %v1744_v45 = vld [vmem:[#allocation11 + $0x18] sm:$0xff]   ;;  %v600_v49 = vrot.slane %v595_v37, %v599_v47  ;;  %p1949_p1 = scmp.lt.s32.totalorder %s1206_s4, %s1947_s23  ;;  %p1950_p3 = scmp.lt.s32.totalorder %s1948_s29, %s1942_s15 }
  0xb5   : > { %v1745_v46 = vld [vmem:[#allocation11 + $0x10] sm:$0xff]   ;;  %v1746_v2 = vld [vmem:[#allocation11 + $0x8] sm:$0xff]   ;;  %v1747_v3 = vld [vmem:[#allocation11] sm:$0xff]   ;;  %p1945_p9 = pneg %p1944_p5 }
  0xb6   : > { %1513 = vmatpush3.bf16.msra.mxu1 %v1714_v12  ;;  %694 = vmatpush1.bf16.msra.mxu0 %v1715_v13  ;;  %v1428_v48 = vld [vmem:[%s2491_s5] ss:$0 sm:$0xff]  ;;  %v1748_v4 = vld [vmem:[#allocation13 + $0x38] sm:$0xff]   ;;  %v1750_v6 = vld [vmem:[#allocation13 + $0x28] sm:$0xff]   ;;  %p1951_p4 = por %p1950_p3, %p1949_p1 }
  0xb7   : > { %1514 = vmatprep.subr.bf16.mxu1 %v2065_v0  ;;  %695 = vmatprep.subr.bf16.mxu0 %v1716_v14  ;;  %v1749_v5 = vld [vmem:[#allocation13 + $0x30] sm:$0xff]   ;;  %v1751_v7 = vld [vmem:[#allocation13 + $0x20] sm:$0xff]   ;;  %v1752_v8 = vld [vmem:[#allocation13 + $0x18] sm:$0xff]  }
  0xb8   : > { %v1753_v9 = vld [vmem:[#allocation13 + $0x10] sm:$0xff]   ;;  %p1952_p8 = pnand %p1951_p4, %p1945_p9 }
  0xb9   : > { %v1437_v10 = vld [vmem:[%s2493_s7] ss:$0 sm:$0xff] }
  0xba   : > { %1515 = vmatpush3.bf16.msra.mxu1 %v1718_v15  ;;  %696 = vmatpush1.bf16.msra.mxu0 %v1719_v16 }
  0xbb   : > { %1516 = vmatprep.subr.bf16.mxu1 %v2065_v0  ;;  %697 = vmatprep.subr.bf16.mxu0 %v1720_v17 }
  0xbe   : > { %1517 = vmatpush3.bf16.msra.mxu1 %v1722_v18  ;;  %698 = vmatpush1.bf16.msra.mxu0 %v1723_v19  ;;  %v1754_v18 = vld [vmem:[#allocation13 + $0x8] sm:$0xff]   ;;  %v1755_v19 = vld [vmem:[#allocation13] sm:$0xff]  }
  0xbf   : > { %1518 = vmatprep.subr.bf16.mxu1 %v2065_v0  ;;  %699 = vmatprep.subr.bf16.mxu0 %v1724_v20  ;;  %v1446_v20 = vld [vmem:[%s2495_s9] ss:$0 sm:$0xff] }
  0xc2   : > { %1519 = vmatpush3.bf16.msra.mxu1 %v1726_v21  ;;  %700 = vmatpush1.bf16.msra.mxu0 %v1727_v22 }
  0xc3   : > { %1520 = vmatprep.subr.bf16.mxu1 %v2065_v0  ;;  %701 = vmatprep.subr.bf16.mxu0 %v1728_v23 }
  0xc6   : > { %1521 = vmatpush3.bf16.msra.mxu1 %v1730_v24  ;;  %702 = vmatpush1.bf16.msra.mxu0 %v1731_v25 }
  0xc7   : > { %1546 = vmatprep.subr.bf16.mxu1 %v2065_v0  ;;  %1526 = vmatprep.subr.bf16.mxu0 %v2065_v0 }
  0xc9   : > { %1523 = vmatmul.mubr.bf16.vlgmr.msra.gmra.mxu1 %v577_v26  ;;  %720 = vmatmul.mubr.bf16.vlgmr.msra.gmra.mxu0 %v578_v27 }
  0xca   : > { %1562 = vmatprep.mubr.msk.bf16.mxu1 %vm2066_vm0, %v2065_v0  ;;  %1527 = vmatpush3.bf16.msra.mxu0 %v1732_v28 }
  0xcb   : > { %1542 = vmatprep.mubr.msk.bf16.mxu0 %vm2066_vm0, %v2065_v0  ;;  %1528 = vmatprep.subr.bf16.mxu0 %v2065_v0 }
  0xcc   : > { %1547 = vmatpush3.bf16.msra.mxu1 %v1740_v41 }
  0xcd   : > { %1548 = vmatprep.subr.bf16.mxu1 %v2065_v0 }
  0xce   : > { %1529 = vmatpush3.bf16.msra.mxu0 %v1733_v29 }
  0xcf   : > { %1530 = vmatprep.subr.bf16.mxu0 %v2065_v0 }
  0xd0   : > { %1549 = vmatpush3.bf16.msra.mxu1 %v1741_v42 }
  0xd1   : > { %1550 = vmatprep.subr.bf16.mxu1 %v2065_v0 }
  0xd2   : > { %1531 = vmatpush3.bf16.msra.mxu0 %v1734_v30 }
  0xd3   : > { %1532 = vmatprep.subr.bf16.mxu0 %v2065_v0 }
  0xd4   : > { %1551 = vmatpush3.bf16.msra.mxu1 %v1742_v43 }
  0xd5   : > { %1552 = vmatprep.subr.bf16.mxu1 %v2065_v0 }
  0xd6   : > { %1533 = vmatpush3.bf16.msra.mxu0 %v1735_v31 }
  0xd7   : > { %1534 = vmatprep.subr.bf16.mxu0 %v2065_v0 }
  0xd8   : > { %1553 = vmatpush3.bf16.msra.mxu1 %v1743_v44 }
  0xd9   : > { %1554 = vmatprep.subr.bf16.mxu1 %v2065_v0 }
  0xda   : > { %1535 = vmatpush3.bf16.msra.mxu0 %v1736_v32 }
  0xdb   : > { %1536 = vmatprep.subr.bf16.mxu0 %v2065_v0 }
  0xdc   : > { %1555 = vmatpush3.bf16.msra.mxu1 %v1744_v45 }
  0xdd   : > { %1556 = vmatprep.subr.bf16.mxu1 %v2065_v0 }
  0xde   : > { %1537 = vmatpush3.bf16.msra.mxu0 %v1737_v33 }
  0xdf   : > { %1538 = vmatprep.subr.bf16.mxu0 %v2065_v0 }
  0xe0   : > { %1557 = vmatpush3.bf16.msra.mxu1 %v1745_v46 }
  0xe1   : > { %1558 = vmatprep.subr.bf16.mxu1 %v2065_v0 }
  0xe2   : > { %1539 = vmatpush3.bf16.msra.mxu0 %v1738_v38 }
  0xe3   : > { %1540 = vmatprep.subr.bf16.mxu0 %v2065_v0 }
  0xe4   : > { %1559 = vmatpush3.bf16.msra.mxu1 %v1746_v2 }
  0xe5   : > { %1560 = vmatprep.subr.bf16.mxu1 %v2065_v0 }
  0xe6   : > { %1541 = vmatpush3.bf16.msra.mxu0 %v1739_v40 }
  0xe7   : > { %1566 = vmatprep.subr.bf16.mxu0 %v2065_v0 }
  0xe8   : > { %1561 = vmatpush3.bf16.msra.mxu1 %v1747_v3 }
 0x189   : > { %v835_v50 = vpop.f32.mrf.mxu1  ;;  %v721_v52 = vpop.f32.mrf.mxu0 }
 0x18a   : > { %v836_v51 = vadd.f32 %v1428_v48, %v835_v50  ;;  %v722_v53 = vadd.f32 %v721_v52, %v600_v49 }
 0x18b   : > { %v1524_v54 = vpop.f32.mrf.mxu1  ;;  %v723_v56 = vpop.f32.mrf.mxu0 }
 0x18c   : > { %v841_v55 = vmax.f32 %v836_v51, 0.0  ;;  %v728_v57 = vmax.f32 %v722_v53, 0.0  ;;  %v724_v58 = vadd.f32 %v723_v56, %v604_v39 }
 0x18d   : > { %v838_v59 = vpop.f32.mrf.mxu1  ;;  %v725_v60 = vpop.f32.mrf.mxu0 }
 0x18e   : > { %v842_v61 = vadd.f32 %v841_v55, %v728_v57  ;;  %v729_v24 = vmax.f32 %v724_v58, 0.0 }
 0x18f   : > { %v1525_v62 = vpop.f32.mrf.mxu1  ;;  %v726_v63 = vpop.f32.mrf.mxu0 }
 0x190   : > { %v843_v1 = vpack.c.bf16 %v842_v61, %v842_v61 }
 0x192   : > { %1543 = vmatmul.mubr.bf16.vlgmr.msra.gmra.mxu0 %v843_v1 }
 0x193   : > { %1582 = vmatprep.mubr.msk.bf16.mxu0 %vm2066_vm0, %v2065_v0  ;;  %1567 = vmatpush3.bf16.msra.mxu0 %v1748_v4 }
 0x194   : > { %1568 = vmatprep.subr.bf16.mxu0 %v2065_v0 }
 0x197   : > { %1569 = vmatpush3.bf16.msra.mxu0 %v1749_v5 }
 0x198   : > { %1570 = vmatprep.subr.bf16.mxu0 %v2065_v0 }
 0x19b   : > { %1571 = vmatpush3.bf16.msra.mxu0 %v1750_v6 }
 0x19c   : > { %1572 = vmatprep.subr.bf16.mxu0 %v2065_v0 }
 0x19f   : > { %1573 = vmatpush3.bf16.msra.mxu0 %v1751_v7 }
 0x1a0   : > { %1574 = vmatprep.subr.bf16.mxu0 %v2065_v0 }
 0x1a3   : > { %1575 = vmatpush3.bf16.msra.mxu0 %v1752_v8 }
 0x1a4   : > { %1576 = vmatprep.subr.bf16.mxu0 %v2065_v0 }
 0x1a7   : > { %1577 = vmatpush3.bf16.msra.mxu0 %v1753_v9 }
 0x1a8   : > { %1578 = vmatprep.subr.bf16.mxu0 %v2065_v0 }
 0x1ab   : > { %1579 = vmatpush3.bf16.msra.mxu0 %v1754_v18 }
 0x1ac   : > { %1580 = vmatprep.subr.bf16.mxu0 %v2065_v0 }
 0x1af   : > { %1581 = vmatpush3.bf16.msra.mxu0 %v1755_v19 }
 0x252   : > { %v949_v11 = vpop.f32.mrf.mxu0 }
 0x253   : > { %v950_v12 = vadd.f32 %v1437_v10, %v949_v11 }
 0x254   : > { %v1544_v13 = vpop.f32.mrf.mxu0 }
 0x255   : > { %v955_v14 = vmax.f32 %v950_v12, 0.0 }
 0x256   : > { %v952_v15 = vpop.f32.mrf.mxu0 }
 0x257   : > { %v956_v16 = vpack.c.bf16 %v955_v14, %v955_v14 }
 0x258   : > { %v1545_v17 = vpop.f32.mrf.mxu0 }
 0x259   : > { %1563 = vmatmul.mubr.bf16.vlgmr.msra.gmra.mxu1 %v956_v16  ;;  %957 = vst [vmem:[%s568_s30] sm:$0xf] %v956_v16 }
 0x319   : > { %v1063_v21 = vpop.f32.mrf.mxu1 }
 0x31a   : > { %v1064_v22 = vadd.f32 %v1446_v20, %v1063_v21 }
 0x31b   : > { %v1564_v23 = vpop.f32.mrf.mxu1 }
 0x31c   : > { %v1069_v25 = vmax.f32 %v1064_v22, 0.0 }
 0x31d   : > { %v1066_v26 = vpop.f32.mrf.mxu1 }
 0x31e   : > { %v1070_v27 = vadd.f32 %v1069_v25, %v729_v24 }
 0x31f   : > { %v1565_v28 = vpop.f32.mrf.mxu1 }
 0x320   : > { %v1071_v29 = vpack.c.bf16 %v1070_v27, %v1070_v27 }
 0x322   : > { %1583 = vmatmul.mubr.bf16.vlgmr.msra.gmra.mxu0 %v1071_v29 }
 0x323   : > { %1955 = shalt.err (!%p1952_p8)
}
 0x324   : > { %s1956_s6 = scalar_lea.hbm %s1203_s19, 64  ;;  %s1960_s30 = scalar_lea.hbm %s2498_s12, 128 }
 0x325   : > { %p1957_p7 = scmp.ne.s32.totalorder %s1203_s19, %s1956_s6  ;;  %p1961_p2 = scmp.lt.s32.totalorder %s1203_s19, %s2498_s12 }
 0x326   : > { %p1962_p10 = scmp.lt.s32.totalorder %s1960_s30, %s1956_s6 }
 0x327   : > { %p1958_p12 = pnand %p1957_p7, %p2539_p13 }
 0x328   : > { %p1963_p11 = por %p1962_p10, %p1961_p2 }
 0x329   : > { %p1959_p6 = pneg %p1958_p12 }
 0x32b   : > { %p1964_p0 = pnand %p1963_p11, %p1959_p6 }
 0x32d   : > { %1967 = shalt.err (!%p1964_p0)
}
 0x32e   : > { %1610 = dma.vmem_to_hbm [thread:$0]  (%p2539_p13), %s1206_s4, 64, %s1203_s19, %s1187_s10   ;;  %v1455_v0 = vld [vmem:[%s2497_s11] ss:$0 sm:$0xff] }
 0x32f   : > { %s575_s15 = scalar_lea.vmem [#allocation15], %s2338_s21  ;;  %s2540_s6 = sld [smem:[#allocation33_spill]] }
 0x330   : > { %s1218_s20 = sshll.u32 %s575_s15, 4  ;;  %s1192_s19 = scalar_lea.sflag [#allocation16], %s2335_s27  ;;  %s1219_s20 = int_to_ptr.vmem [resolvable:$true] %s1218_s20 }
 0x331   : > { %s1968_s4 = scalar_lea.vmem %s1219_s20, 64  ;;  %s2069_s21 = smov [#allocation15]  }
 0x332   : > { %p1969_p5 = scmp.ne.s32.totalorder %s1219_s20, %s1968_s4  ;;  %s1972_s10 = sshll.u32 %s2069_s21, 4  ;;  %s1973_s10 = int_to_ptr.vmem [resolvable:$false] %s1972_s10 }
 0x333   : > { %s1974_s22 = scalar_lea.vmem %s1973_s10, 128  ;;  %p1975_p3 = scmp.lt.s32.totalorder %s1219_s20, %s1973_s10 }
 0x334   : > { %p1970_p9 = pnand %p1969_p5, %p2539_p13  ;;  %p1976_p4 = scmp.lt.s32.totalorder %s1974_s22, %s1968_s4 }
 0x335   : > { %s2449_s8 = scalar_lea.hbm %s2540_s6, %s1466_s18 }
 0x336   : > { %p1971_p1 = pneg %p1970_p9  ;;  %p1977_p8 = por %p1976_p4, %p1975_p3 }
 0x338   : > { %p1978_p7 = pnand %p1977_p8, %p1971_p1 }
 0x3e2   : > { %v1177_v30 = vpop.f32.mrf.mxu0 }
 0x3e3   : > { %v1178_v31 = vadd.f32 %v1455_v0, %v1177_v30 }
 0x3e4   : > { %v1584_v32 = vpop.f32.mrf.mxu0 }
 0x3e5   : > { %v1183_v33 = vmax.f32 %v1178_v31, 0.0 }
 0x3e6   : > { %v1180_v34 = vpop.f32.mrf.mxu0 }
 0x3e7   : > { %v1184_v35 = vpack.c.bf16 %v1183_v33, %v1183_v33 }
 0x3e8   : > { %v1585_v36 = vpop.f32.mrf.mxu0 }
 0x3e9   : > { %1185 = vst [vmem:[%s575_s15] sm:$0xf] %v1184_v35 }
 0x3ea   : > { %1981 = shalt.err (!%p1978_p7)
}
 0x3eb   : > { %s1982_s14 = scalar_lea.hbm %s2449_s8, 64  ;;  %s1986_s30 = scalar_lea.hbm %s2540_s6, 128 }
 0x3ec   : > { %p1983_p12 = scmp.ne.s32.totalorder %s2449_s8, %s1982_s14  ;;  %p1987_p10 = scmp.lt.s32.totalorder %s2449_s8, %s2540_s6 }
 0x3ed   : > { %p1988_p11 = scmp.lt.s32.totalorder %s1986_s30, %s1982_s14 }
 0x3ee   : > { %p1984_p6 = pnand %p1983_p12, %p2539_p13 }
 0x3ef   : > { %p1989_p0 = por %p1988_p11, %p1987_p10 }
 0x3f0   : > { %p1985_p2 = pneg %p1984_p6 }
 0x3f2   : > { %p1990_p5 = pnand %p1989_p0, %p1985_p2 }
 0x3f4   : > { %1993 = shalt.err (!%p1990_p5)
}
 0x3f5   : > { %1611 = dma.vmem_to_hbm [thread:$0]  (%p2539_p13), %s1219_s20, 64, %s2449_s8, %s1192_s19  }
 0x3f6 PF: > { %s2541_s2 = sld [smem:[#allocation27_spill]]  ;;  %s1230_s16 = sand.u32 1, %s2040_s25  }
 0x3f7   : > { %p2543_p1 = scmp.ge.s32.totalorder %s2052_s28, 2  ;;  %s1231_s15 = scalar_lea.sflag [#allocation4], %s1230_s16 }
 0x3fc   : > { %p2542_p9 = scmp.ne.s32.totalorder %s2541_s2, 0 }
 0x3fe   : > { %p1638_p3 = pnand %p2543_p1, %p2542_p9 }
 0x400   : > { %p1639_p4 = pneg %p1638_p3 }
 0x402   : > { %2031 = dma.done.wait (%p1639_p4), %s1231_s15, 64  }
 0x403   : > { %2033 = vsyncadd (%p1639_p4), %s1231_s15, 4294967232  ;;  %s1240_s23 = scalar_lea.sflag [#allocation16], %s1230_s16 }
 0x404   : > { %2035 = dma.done.wait (%p1639_p4), %s1240_s23, 64  }
 0x405   : > { %2037 = vsyncadd (%p1639_p4), %s1240_s23, 4294967232  ;;  %s2544_s28 = sld [smem:[#allocation25_spill]]  ;;  %s2547_s25 = smov %s2044_s26 }
 0x406   : > { %s2545_s13 = sld [smem:[#allocation24_spill]] }
 0x407   : > { %s2546_s27 = sld [smem:[#allocation26_spill]] }
 0x40b   : > { %p35_p13 = scmp.ge.s32.totalorder %s2544_s28, 4  }
 0x40c   : > { %s2548_s26 = smov %s2545_s13 }
 0x40d   :  { %37 = sbr.rel (!%p35_p13) target bundleno = 18 (0x12), region = 163 }
 0x412   :  { %1245 = vsyncpa [#allocation3], 1 }
 0x413   :  { %1247 = vsyncpa [#allocation3 + $0x1], 1 }
 0x414   :  { %1248 = vsyncpa [#allocation6], 1 }
 0x415   :  { %1250 = vsyncpa [#allocation6 + $0x1], 1 }
 0x416   :  { %1251 = vsyncpa [#allocation9], 1 }
 0x417   :  { %1252 = vsyncpa [#allocation12], 1 }
 0x418   :  { %1253 = vsyncpa [#allocation4], 1 }
 0x419   :  { %1255 = vsyncpa [#allocation4 + $0x1], 1 }
 0x41a   :  { %1256 = vsyncpa [#allocation16], 1 }
 0x41b   :  { %1258 = vsyncpa [#allocation16 + $0x1], 1 }

</bundles_post_ra>
